<compile_context>
chip_gen: v7x
topology: tpu7x:2x2x1
jax: 0.10.0
libtpu: 0.0.40
codegen_flags: <defaults>
</compile_context>

<pallas_src>
import math
import jax
import jax.numpy as jnp
from jax.experimental import pallas as pl
from jax.experimental.pallas import tpu as pltpu


def _detection_head_kernel(x_ref, w0_ref, w1_ref, w2_ref, b_ref,
                           cls_ref, reg_ref):
    """Per-grid-step body.

    x_ref   : (BB, Cin, TP)    channels on sublanes, pixels on lanes
    w0_ref  : (F, Cin)         det_conv weight
    w1_ref  : (2F, F)          [cls1 ; reg1] fused
    w2_ref  : (nc+4, 2F)       block-diagonal [cls2 | 0 ; 0 | reg2]
    b_ref   : (3F + nc+4, 1)   packed [b_det ; b_cls1 ; b_reg1 ; b_cls2 ; b_reg2], f32
    cls_ref : (BB, nc, TP)
    reg_ref : (BB, 4,  TP)
    """
    feat = w0_ref.shape[0]
    n_out = w2_ref.shape[0]
    nc = n_out - 4
    bb = x_ref.shape[0]

    w0 = w0_ref[...]
    w1 = w1_ref[...]
    w2 = w2_ref[...]
    b_all = b_ref[...]                       # f32
    b0 = b_all[:feat]
    b1 = b_all[feat:3 * feat]
    b2 = b_all[3 * feat:]

    # BB is a small static batch sub-block (usually 1); unrolled at trace time.
    for b in range(bb):
        # in-kernel dtype cast (no wrapper-side HBM conversion pass)
        x = x_ref[b].astype(w0.dtype)
        # det_conv: d = relu(W0 @ x + b0)                         -> (F, TP)
        d = jnp.dot(w0, x, preferred_element_type=jnp.float32) + b0
        d = jnp.maximum(d, 0.0).astype(w1.dtype)
        # fused first conv of both heads: [c ; r] = relu(W1 @ d)  -> (2F, TP)
        cr = jnp.dot(w1, d, preferred_element_type=jnp.float32) + b1
        cr = jnp.maximum(cr, 0.0).astype(w2.dtype)
        # fused (block-diagonal) second conv: [cls ; reg]         -> (nc+4, TP)
        out = jnp.dot(w2, cr, preferred_element_type=jnp.float32) + b2
        cls_ref[b] = out[:nc].astype(cls_ref.dtype)
        reg_ref[b] = out[nc:].astype(reg_ref.dtype)


def _choose_tiling(bs, hw, cin, feat, n_out, x_bytes, out_bytes, *,
                   tpix, target_step_bytes, vmem_budget_bytes):
    """Pick (BB, TP, n_pix_tiles) under a per-step VMEM budget."""
    lane = 128
    cdiv = lambda a, b: -(-a // b)
    rup = lambda a, m: cdiv(a, m) * m

    def vmem_bytes(bb, tp):
        io = 2 * bb * (cin * x_bytes + n_out * out_bytes) * tp   # dbl-buffered streams
        interm = 4 * bb * (cin + 3 * feat + n_out) * tp          # f32 temporaries
        return io + interm + (64 << 10)                          # params + slack

    # 1) Balanced pixel tiling toward `tpix` (avoids ~2x tail padding).
    n_pix = max(1, cdiv(hw, tpix))
    tp = max(lane, rup(cdiv(hw, n_pix), lane))

    # 2) Clamp TP so a single-row step fits the VMEM budget (safe on v5e's
    #    16 MiB scoped default once vmem_limit_bytes is raised, and well
    #    under v7x's 64 MiB physical per-TC VMEM).
    per_lane = 2 * (cin * x_bytes + n_out * out_bytes) + 4 * (cin + 3 * feat + n_out)
    tp_max = max(lane, ((vmem_budget_bytes - (64 << 10)) // per_lane) // lane * lane)
    tp = min(tp, tp_max)
    n_pix = cdiv(hw, tp)

    # 3) v7x has 2 TensorCores: keep >= 2 grid steps when possible.
    if bs == 1 and n_pix == 1 and hw > lane:
        tp = max(lane, rup(cdiv(hw, 2), lane))
        n_pix = cdiv(hw, tp)

    # 4) Batch sub-blocking: amortize the ~0.35us per-grid-step overhead by
    #    moving >= target_step_bytes per step.  BB must divide bs, keep >= 2
    #    total steps, and fit the VMEM budget.
    per_row = (cin * x_bytes + n_out * out_bytes) * tp
    bb_desired = max(1, cdiv(target_step_bytes, per_row))
    min_steps = 2 if bs * n_pix >= 2 else 1
    bb = 1
    for cand in range(1, bs + 1):
        if bs % cand or cand > bb_desired:
            continue
        if (bs // cand) * n_pix < min_steps:
            continue
        if vmem_bytes(cand, tp) > vmem_budget_bytes:
            continue
        bb = cand
    return bb, tp, n_pix, vmem_bytes(bb, tp)


def detection_head_forward(x_nchw, params, *, tpix=32768,
                           compute_dtype=None, out_dtype=None,
                           target_step_bytes=1 << 20,
                           vmem_budget_bytes=20 << 20):
    """DetectionHead.forward.

    Args:
      x_nchw: (bs, Cin, H, W) input (PyTorch NCHW convention).  Its dtype is
              used as-is (pass bf16 from the producer to halve HBM reads —
              no wrapper-side cast is performed).
      params: per-layer weights (out, in) and biases (out,), PyTorch-style.
      tpix:   target pixel-lane tile; balanced-split and VMEM-clamped.
      compute_dtype: dtype fed to the MXU (default: x dtype); accumulation,
              bias add and ReLU are always f32.
      out_dtype: output dtype (default: x dtype).

    Returns:
      cls_logits: (bs, num_classes, H, W)
      reg_logits: (bs, 4, H, W)
    """
    bs, cin, h, w = x_nchw.shape
    hw = h * w
    feat = params["w_det"].shape[0]
    nc = params["w_cls2"].shape[0]
    n_out = nc + 4

    if compute_dtype is None:
        compute_dtype = x_nchw.dtype
    if out_dtype is None:
        out_dtype = x_nchw.dtype

    # ---- pack / fuse parameters (5 kernel inputs instead of 10) -----------
    w0 = params["w_det"].astype(compute_dtype)                        # (F, Cin)
    w1 = jnp.concatenate([params["w_cls1"], params["w_reg1"]],
                         axis=0).astype(compute_dtype)                # (2F, F)
    w2 = jnp.zeros((n_out, 2 * feat), jnp.float32)
    w2 = w2.at[:nc, :feat].set(params["w_cls2"])
    w2 = w2.at[nc:, feat:].set(params["w_reg2"])
    w2 = w2.astype(compute_dtype)                                     # (nc+4, 2F)
    b_all = jnp.concatenate(
        [params["b_det"], params["b_cls1"], params["b_reg1"],
         params["b_cls2"], params["b_reg2"]]
    ).reshape(3 * feat + n_out, 1).astype(jnp.float32)                # (3F+nc+4, 1)

    x_bytes = jnp.dtype(x_nchw.dtype).itemsize
    out_bytes = jnp.dtype(out_dtype).itemsize
    bb, tp, n_pix, vmem_est = _choose_tiling(
        bs, hw, cin, feat, n_out, x_bytes, out_bytes,
        tpix=tpix, target_step_bytes=target_step_bytes,
        vmem_budget_bytes=vmem_budget_bytes)
    grid = (bs // bb, n_pix)

    # NCHW is already (bs, Cin, H*W) contiguous -> free reshape, no transpose,
    # no dtype cast and no jnp.pad (a ragged last pixel tile is handled by
    # Pallas' masked edge blocks; per-pixel math keeps garbage columns local).
    x3 = x_nchw.reshape(bs, cin, hw)

    def full2d(a):
        # tiny parameter arrays, resident in VMEM (constant block index)
        return pl.BlockSpec(a.shape, lambda i, p: (0, 0))

    flops = 2 * bs * hw * (cin * feat + feat * 2 * feat + 2 * feat * n_out)
    param_bytes = sum(int(a.size) * a.dtype.itemsize for a in (w0, w1, w2, b_all))
    bytes_accessed = bs * hw * (cin * x_bytes + n_out * out_bytes) + param_bytes

    cls3, reg3 = pl.pallas_call(
        _detection_head_kernel,
        grid=grid,
        in_specs=[
            pl.BlockSpec((bb, cin, tp), lambda i, p: (i, 0, p)),
            full2d(w0), full2d(w1), full2d(w2), full2d(b_all),
        ],
        out_specs=[
            pl.BlockSpec((bb, nc, tp), lambda i, p: (i, 0, p)),
            pl.BlockSpec((bb, 4, tp), lambda i, p: (i, 0, p)),
        ],
        out_shape=(jax.ShapeDtypeStruct((bs, nc, hw), out_dtype),
                   jax.ShapeDtypeStruct((bs, 4, hw), out_dtype)),
        compiler_params=pltpu.CompilerParams(
            dimension_semantics=("parallel", "parallel"),
            vmem_limit_bytes=int(min(32 << 20, max(8 << 20, 2 * vmem_est)))),
        cost_estimate=pl.CostEstimate(flops=flops, transcendentals=0,
                                      bytes_accessed=bytes_accessed),
    )(x3, w0, w1, w2, b_all)

    # Layout-compatible reshapes only — no extra HBM slicing passes.
    cls_logits = cls3.reshape(bs, nc, h, w)
    reg_logits = reg3.reshape(bs, 4, h, w)
    return cls_logits, reg_logits


def init_params(key, infeatures, features, num_classes=1):
    """Xavier-normal conv1x1 weights stored as (out, in), PyTorch-style.

    The PyTorch module zero-inits biases; small random biases are used here so
    the bias path of the kernel is actually exercised (forward semantics are
    identical for any parameter values).
    """
    def xavier_normal(k, fan_out, fan_in):
        std = math.sqrt(2.0 / (fan_in + fan_out))
        return std * jax.random.normal(k, (fan_out, fan_in), dtype=jnp.float32)

    ks = jax.random.split(key, 10)
    return {
        "w_det":  xavier_normal(ks[0], features, infeatures),
        "b_det":  0.01 * jax.random.normal(ks[1], (features,), jnp.float32),
        "w_cls1": xavier_normal(ks[2], features, features),
        "b_cls1": 0.01 * jax.random.normal(ks[3], (features,), jnp.float32),
        "w_cls2": xavier_normal(ks[4], num_classes, features),
        "b_cls2": 0.01 * jax.random.normal(ks[5], (num_classes,), jnp.float32),
        "w_reg1": xavier_normal(ks[6], features, features),
        "b_reg1": 0.01 * jax.random.normal(ks[7], (features,), jnp.float32),
        "w_reg2": xavier_normal(ks[8], 4, features),
        "b_reg2": 0.01 * jax.random.normal(ks[9], (4,), jnp.float32),
    }


def _reference_forward(x_nchw, params):
    """Plain-JAX reference of the unfused 1x1-conv chain (NCHW)."""
    def conv1x1(t, wgt, bias):
        return jnp.einsum("oc,bchw->bohw", wgt, t) + bias[None, :, None, None]

    d = jax.nn.relu(conv1x1(x_nchw, params["w_det"], params["b_det"]))
    c = jax.nn.relu(conv1x1(d, params["w_cls1"], params["b_cls1"]))
    cls = conv1x1(c, params["w_cls2"], params["b_cls2"])
    r = jax.nn.relu(conv1x1(d, params["w_reg1"], params["b_reg1"]))
    reg = conv1x1(r, params["w_reg2"], params["b_reg2"])
    return cls, reg


if __name__ == "__main__":
    # Small shapes consistent with the module:
    #   x: (batch=2, infeatures=4, H=16, W=16), features=8, num_classes=1
    bs, infeatures, features, H, W = 2, 4, 8, 16, 16
    num_classes = 1

    key = jax.random.PRNGKey(0)
    k_param, k_x = jax.random.split(key)
    params = init_params(k_param, infeatures, features, num_classes)
    x = jax.random.normal(k_x, (bs, infeatures, H, W), dtype=jnp.float32)

    cls_ref, reg_ref = _reference_forward(x, params)

    # f32 path (matches the PyTorch module numerics).
    cls_logits, reg_logits = detection_head_forward(x, params)
    jax.block_until_ready((cls_logits, reg_logits))
    assert cls_logits.shape == (bs, num_classes, H, W)
    assert reg_logits.shape == (bs, 4, H, W)
    assert jnp.allclose(cls_logits, cls_ref, atol=1e-5, rtol=1e-5)
    assert jnp.allclose(reg_logits, reg_ref, atol=1e-5, rtol=1e-5)

    # bf16 path: the *producer* hands x over in bf16 (no wrapper-side cast),
    # legitimately halving HBM read traffic for this memory-bound head.
    x_bf16 = x.astype(jnp.bfloat16)
    cls_bf16, reg_bf16 = detection_head_forward(x_bf16, params)
    jax.block_until_ready((cls_bf16, reg_bf16))
    assert jnp.allclose(cls_bf16.astype(jnp.float32), cls_ref, atol=1e-1, rtol=1e-1)
    assert jnp.allclose(reg_bf16.astype(jnp.float32), reg_ref, atol=1e-1, rtol=1e-1)

    # TODO(synk): apply_bbox_regression / gen_rf_anchors / build_targets /
    # compute_loss are training/post-processing utilities outside forward();
    # not ported to Pallas.

    print("KERNEL_OK")
</pallas_src>

<mosaic_0001>
module attributes {stable_mosaic.version = 11 : i64} {
  func.func @_detection_head_kernel(%arg0: i32, %arg1: i32, %arg2: memref<1x4x256xf32, #tpu.memory_space<vmem>>, %arg3: memref<8x4xf32, #tpu.memory_space<vmem>>, %arg4: memref<16x8xf32, #tpu.memory_space<vmem>>, %arg5: memref<5x16xf32, #tpu.memory_space<vmem>>, %arg6: memref<29x1xf32, #tpu.memory_space<vmem>>, %arg7: memref<1x1x256xf32, #tpu.memory_space<vmem>>, %arg8: memref<1x4x256xf32, #tpu.memory_space<vmem>>) attributes {dimension_semantics = [#tpu.dimension_semantics<parallel>, #tpu.dimension_semantics<parallel>], iteration_bounds = array<i64: 2, 1>, scalar_prefetch = 0 : i64, scratch_operands = 0 : i64, tpu.core_type = #tpu.core_type<tc>, window_params = [{transform_indices = @transform_0, window_bounds = array<i64: 1, 4, 256>}, {pipeline_mode = #tpu.pipeline_mode<synchronous>, transform_indices = @transform_1, window_bounds = array<i64: 8, 4>}, {pipeline_mode = #tpu.pipeline_mode<synchronous>, transform_indices = @transform_2, window_bounds = array<i64: 16, 8>}, {pipeline_mode = #tpu.pipeline_mode<synchronous>, transform_indices = @transform_3, window_bounds = array<i64: 5, 16>}, {pipeline_mode = #tpu.pipeline_mode<synchronous>, transform_indices = @transform_4, window_bounds = array<i64: 29, 1>}, {transform_indices = @transform_5, window_bounds = array<i64: 1, 1, 256>}, {transform_indices = @transform_6, window_bounds = array<i64: 1, 4, 256>}]} {
    %c0 = arith.constant 0 : index
    %c0_0 = arith.constant 0 : index
    %0 = vector.load %arg3[%c0, %c0_0] : memref<8x4xf32, #tpu.memory_space<vmem>>, vector<8x4xf32>
    %c0_1 = arith.constant 0 : index
    %c0_2 = arith.constant 0 : index
    %1 = vector.load %arg4[%c0_1, %c0_2] : memref<16x8xf32, #tpu.memory_space<vmem>>, vector<16x8xf32>
    %c0_3 = arith.constant 0 : index
    %c0_4 = arith.constant 0 : index
    %2 = vector.load %arg5[%c0_3, %c0_4] : memref<5x16xf32, #tpu.memory_space<vmem>>, vector<5x16xf32>
    %c0_5 = arith.constant 0 : index
    %c0_6 = arith.constant 0 : index
    %3 = vector.load %arg6[%c0_5, %c0_6] : memref<29x1xf32, #tpu.memory_space<vmem>>, vector<29x1xf32>
    %4 = vector.extract_strided_slice %3 {offsets = [0, 0], sizes = [8, 1], strides = [1, 1]} : vector<29x1xf32> to vector<8x1xf32>
    %5 = vector.extract_strided_slice %3 {offsets = [8, 0], sizes = [16, 1], strides = [1, 1]} : vector<29x1xf32> to vector<16x1xf32>
    %6 = vector.extract_strided_slice %3 {offsets = [24, 0], sizes = [5, 1], strides = [1, 1]} : vector<29x1xf32> to vector<5x1xf32>
    %c0_7 = arith.constant 0 : index
    %c0_8 = arith.constant 0 : index
    %c0_9 = arith.constant 0 : index
    %7 = vector.load %arg2[%c0_7, %c0_8, %c0_9] : memref<1x4x256xf32, #tpu.memory_space<vmem>>, vector<1x4x256xf32>
    %8 = vector.shape_cast %7 : vector<1x4x256xf32> to vector<4x256xf32>
    %cst = arith.constant dense<0.000000e+00> : vector<8x256xf32>
    %9 = tpu.matmul %0, %8, %cst {dimension_numbers = #tpu.dot_dimension_numbers<[1], [0], [0], [1], [0, 0, 1, 1], [], []>} : vector<8x4xf32>, vector<4x256xf32>, vector<8x256xf32> -> vector<8x256xf32>
    %10 = vector.broadcast %4 : vector<8x1xf32> to vector<8x256xf32>
    %11 = arith.addf %9, %10 : vector<8x256xf32>
    %cst_10 = arith.constant 0.000000e+00 : f32
    %12 = vector.broadcast %cst_10 : f32 to vector<8x256xf32>
    %13 = arith.maximumf %11, %12 : vector<8x256xf32>
    %cst_11 = arith.constant dense<0.000000e+00> : vector<16x256xf32>
    %14 = tpu.matmul %1, %13, %cst_11 {dimension_numbers = #tpu.dot_dimension_numbers<[1], [0], [0], [1], [0, 0, 1, 1], [], []>} : vector<16x8xf32>, vector<8x256xf32>, vector<16x256xf32> -> vector<16x256xf32>
    %15 = vector.broadcast %5 : vector<16x1xf32> to vector<16x256xf32>
    %16 = arith.addf %14, %15 : vector<16x256xf32>
    %cst_12 = arith.constant 0.000000e+00 : f32
    %17 = vector.broadcast %cst_12 : f32 to vector<16x256xf32>
    %18 = arith.maximumf %16, %17 : vector<16x256xf32>
    %cst_13 = arith.constant dense<0.000000e+00> : vector<5x256xf32>
    %19 = tpu.matmul %2, %18, %cst_13 {dimension_numbers = #tpu.dot_dimension_numbers<[1], [0], [0], [1], [0, 0, 1, 1], [], []>} : vector<5x16xf32>, vector<16x256xf32>, vector<5x256xf32> -> vector<5x256xf32>
    %20 = vector.broadcast %6 : vector<5x1xf32> to vector<5x256xf32>
    %21 = arith.addf %19, %20 : vector<5x256xf32>
    %22 = vector.extract_strided_slice %21 {offsets = [0, 0], sizes = [1, 256], strides = [1, 1]} : vector<5x256xf32> to vector<1x256xf32>
    %c0_14 = arith.constant 0 : index
    %c0_15 = arith.constant 0 : index
    %c0_16 = arith.constant 0 : index
    %23 = vector.load %arg7[%c0_14, %c0_15, %c0_16] : memref<1x1x256xf32, #tpu.memory_space<vmem>>, vector<1x1x256xf32>
    %24 = vector.shape_cast %23 : vector<1x1x256xf32> to vector<1x256xf32>
    %25 = vector.shape_cast %22 : vector<1x256xf32> to vector<1x1x256xf32>
    tpu.vector_store %arg7[%c0_14, %c0_15, %c0_16], %25 {strides = array<i32>} : memref<1x1x256xf32, #tpu.memory_space<vmem>>, vector<1x1x256xf32>,
    %26 = vector.extract_strided_slice %21 {offsets = [1, 0], sizes = [4, 256], strides = [1, 1]} : vector<5x256xf32> to vector<4x256xf32>
    %c0_17 = arith.constant 0 : index
    %c0_18 = arith.constant 0 : index
    %c0_19 = arith.constant 0 : index
    %27 = vector.load %arg8[%c0_17, %c0_18, %c0_19] : memref<1x4x256xf32, #tpu.memory_space<vmem>>, vector<1x4x256xf32>
    %28 = vector.shape_cast %27 : vector<1x4x256xf32> to vector<4x256xf32>
    %29 = vector.shape_cast %26 : vector<4x256xf32> to vector<1x4x256xf32>
    tpu.vector_store %arg8[%c0_17, %c0_18, %c0_19], %29 {strides = array<i32>} : memref<1x4x256xf32, #tpu.memory_space<vmem>>, vector<1x4x256xf32>,
    return
  }
  func.func @transform_0(%arg0: i32, %arg1: i32) -> (i32, i32, i32) {
    %c0_i32 = arith.constant 0 : i32
    %c0_i32_0 = arith.constant 0 : i32
    return %arg0, %c0_i32, %arg1 : i32, i32, i32
  }
  func.func @transform_1(%arg0: i32, %arg1: i32) -> (i32, i32) {
    %c0_i32 = arith.constant 0 : i32
    %c0_i32_0 = arith.constant 0 : i32
    %c0_i32_1 = arith.constant 0 : i32
    return %c0_i32, %c0_i32_0 : i32, i32
  }
  func.func @transform_2(%arg0: i32, %arg1: i32) -> (i32, i32) {
    %c0_i32 = arith.constant 0 : i32
    %c0_i32_0 = arith.constant 0 : i32
    %c0_i32_1 = arith.constant 0 : i32
    return %c0_i32, %c0_i32_0 : i32, i32
  }
  func.func @transform_3(%arg0: i32, %arg1: i32) -> (i32, i32) {
    %c0_i32 = arith.constant 0 : i32
    %c0_i32_0 = arith.constant 0 : i32
    %c0_i32_1 = arith.constant 0 : i32
    return %c0_i32, %c0_i32_0 : i32, i32
  }
  func.func @transform_4(%arg0: i32, %arg1: i32) -> (i32, i32) {
    %c0_i32 = arith.constant 0 : i32
    %c0_i32_0 = arith.constant 0 : i32
    %c0_i32_1 = arith.constant 0 : i32
    return %c0_i32, %c0_i32_0 : i32, i32
  }
  func.func @transform_5(%arg0: i32, %arg1: i32) -> (i32, i32, i32) {
    %c0_i32 = arith.constant 0 : i32
    %c0_i32_0 = arith.constant 0 : i32
    return %arg0, %c0_i32, %arg1 : i32, i32, i32
  }
  func.func @transform_6(%arg0: i32, %arg1: i32) -> (i32, i32, i32) {
    %c0_i32 = arith.constant 0 : i32
    %c0_i32_0 = arith.constant 0 : i32
    return %arg0, %c0_i32, %arg1 : i32, i32, i32
  }
}

</mosaic_0001>

<bundles_post_ra>
// kernel: tpu_custom_call.1
= control target key start
LH: loop header
LB: loop body
LE: loop exit
PB: predicated region body
PF: predicated region fallthrough
CT: control target
= control target key end

     0   :  { %12 = vsyncpa [#allocation3], 0  ;;  %s1173_s0 = inlined_call_operand.vmem [shape: f32[2,4,256], index: 0, kind: input, shape index: {}]   ;;  %s1174_s1 = inlined_call_operand.vmem [shape: f32[8,4], index: 1, kind: input, shape index: {}]   ;;  %s1175_s2 = inlined_call_operand.vmem [shape: f32[16,8], index: 2, kind: input, shape index: {}]   ;;  %s1176_s3 = inlined_call_operand.vmem [shape: f32[5,16], index: 3, kind: input, shape index: {}]   ;;  %s1177_s4 = inlined_call_operand.vmem [shape: f32[29,1], index: 4, kind: input, shape index: {}]   ;;  %s1178_s5 = inlined_call_operand.hbm [shape: f32[2,1,256], index: 5, kind: output, shape index: {0}]   ;;  %s1179_s6 = inlined_call_operand.hbm [shape: f32[2,4,256], index: 6, kind: output, shape index: {1}]  }
   0x1   :  { %14 = vsyncpa [#allocation3 + $0x1], 0 }
   0x2   :  { %15 = vsyncpa [#allocation5], 0 }
   0x3   :  { %17 = vsyncpa [#allocation5 + $0x1], 0  ;;  %s1002_s21 = smov 0   ;;  %s1004_s22 = smov 0  }
   0x4   :  { %s1006_s23 = smov 0   ;;  %s1008_s24 = smov 0  }
   0x5   :  { %s1010_s25 = smov 0   ;;  %s1012_s26 = smov 0  }
   0x6 LB: > { %s753_s27 = sadd.s32 4294967295, %s960_s26   ;;  %s754_s28 = sadd.s32 4294967294, %s960_s26   ;;  %s960_s26 = sphi %s1012_s26, %s23_s26   ;;  %s956_s25 = sphi %s1010_s25, %s1186_s25   ;;  %s952_s24 = sphi %s1008_s24, %s1185_s24   ;;  %s948_s23 = sphi %s1006_s23, %s1184_s23   ;;  %s944_s22 = sphi %s1004_s22, %s1183_s22   ;;  %s940_s21 = sphi %s1002_s21, %s1182_s21  }
   0x7   : > { %s35_s29 = sadd.s32 1, %s956_s25  ;;  %s156_s30 = sadd.s32 1, %s948_s23 }
   0x8   : > { %p37_p0 = scmp.ge.s32.totalorder %s35_s29, 2  ;;  %p166_p1 = scmp.ne.s32.totalorder %s948_s23, %s944_s22 }
   0x9   : > { %p167_p2 = scmp.eq.s32.totalorder %s753_s27, 1  ;;  %p172_p3 = scmp.ne.s32.totalorder %s944_s22, %s940_s21 }
   0xa   : > { %s1188_s29 = smov (%p37_p0, %s35_s29), 0  ;;  %p173_p5 = scmp.eq.s32.totalorder %s754_s28, 1 }
   0xb   : > { %p1042_p4 = por %p167_p2, %p166_p1  ;;  %s151_s8 = ssub.s32 %s956_s25, %s1188_s29 }
   0xc   : > { %p757_p6 = scmp.ge.s32.totalorder %s960_s26, 1  ;;  %p154_p7 = scmp.eq.s32.totalorder %s151_s8, 0 }
   0xd   : > { %p1049_p8 = por %p173_p5, %p172_p3  ;;  %p244_p9 = scmp.lt.s32.totalorder %s960_s26, 3 }
   0xe   : > { %s1055_s10 = scalar_select %p154_p7, %s948_s23, %s156_s30  }
   0xf   : > { %p245_p10 = pnand %p757_p6, %p244_p9 }
  0x10   : > { %p284_p11 = scmp.lt.s32.totalorder (!%p245_p10), %s952_s24, 1  ;;  %v962_v0 = vmov (!%p245_p10), 0.0   ;;  %v963_v1 = vmov (!%p245_p10), 0   ;;  %v299_v2 = vld [vmem:[%s1177_s4] sm:$0xff] (!%p245_p10)  ;;  %v300_v3 = vld [vmem:[%s1177_s4 + $0x8] sm:$0xff] (!%p245_p10)  ;;  %vm315_vm0 = vcmask (!%p245_p10), 1043456   ;;  %v577_v37 = vlaneseq (!%p245_p10) }
  0x11   : > { %248 = sbr.rel (%p245_p10) target bundleno = 737 (0x2e1), region = 40  ;;  %384 = vmatprep.mubr.f32.mxu0 (!%p245_p10), %v962_v0  ;;  %847 = vset.pattern.permute.xlu0 (!%p245_p10), %v963_v1  ;;  %v295_v6 = vld [vmem:[%s1174_s1] sm:$0xff] (!%p245_p10)  ;;  %vm311_vm1 = vcmask (!%p245_p10), 31744   ;;  %v301_v7 = vld [vmem:[%s1177_s4 + $0x10] sm:$0xff] (!%p245_p10)  ;;  %v302_v8 = vld [vmem:[%s1177_s4 + $0x18] sm:$0x1f] (!%p245_p10) }
  0x12   : > { %306 = vperm.xlu0 (!%p245_p10), %847, %v299_v2   ;;  %474 = vmatprep.mubr.f32.mxu1 (!%p245_p10), %v962_v0  ;;  %v296_v16 = vld [vmem:[%s1175_s2] sm:$0xff] (!%p245_p10)  ;;  %vm403_vm2 = vcmask (!%p245_p10), 64512   ;;  %v297_v17 = vld [vmem:[%s1175_s2 + $0x8] sm:$0xff] (!%p245_p10)  ;;  %vm496_vm3 = vcmask (!%p245_p10), 130048   ;;  %v964_v35 = vmov (!%p245_p10), 1966171168  }
  0x13   : > { %848 = vset.pattern.permute.xlu1 (!%p245_p10), %v963_v1  ;;  %v298_v34 = vld [vmem:[%s1176_s3] sm:$0x1f] (!%p245_p10)  ;;  %v575_v36 = vunpack.c.l.s4 (!%p245_p10), %v964_v35  ;;  %s1087_s18 = sand.u32 (!%p245_p10), 1, %s944_s22   ;;  %v578_v39 = vshrl.u32 (!%p245_p10), %v577_v37, 7  ;;  %vm595_vm4 = vcmask (!%p245_p10), 1042432   ;;  %vm596_vm5 = vcmask (!%p245_p10), 1046532  }
  0x14   : > { %400 = vperm.xlu1 (!%p245_p10), %848, %v301_v7   ;;  %s758_s20 = sshll.u32 (!%p245_p10), %s1087_s18, 1  ;;  %s779_s27 = sshll.u32 (!%p245_p10), %s952_s24, 7  ;;  %vm597_vm6 = vmor (!%p245_p10), %vm595_vm4, %vm596_vm5  ;;  %vm591_vm7 = vcmp.lt.s32.totalorder (!%p245_p10), %v577_v37, 256 }
  0x15   : > { %v576_v38 = vunpack.c.0.s8 (!%p245_p10), %v575_v36  ;;  %s778_s8 = sshll.u32 (!%p245_p10), %s952_s24, 5  ;;  %s275_s11 = scalar_lea.vmem (!%p245_p10), [#allocation2], %s758_s20 }
  0x16   : > { %395 = vperm.xlu0 (!%p245_p10), %847, %v300_v3   ;;  %s626_s12 = sshll.u32 (!%p245_p10), %s275_s11, 4  ;;  %s1096_s15 = scalar_lea.hbm (!%p245_p10), %s1179_s6, %s779_s27  ;;  %s1105_s12 = int_to_ptr.vmem [resolvable:$true] %s626_s12 }
  0x17   : > { %v579_v45 = vsub.s32 (!%p245_p10), %v576_v38, %v578_v39  ;;  %s1103_s17 = scalar_lea.hbm (!%p245_p10), %s1178_s5, %s778_s8  ;;  %s965_s27 = smov (!%p245_p10), [#allocation4]  }
  0x18   : > { %s285_s13 = scalar_select %p284_p11, %s952_s24, 1  ;;  %493 = vperm.xlu1 %848, %v302_v8  }
  0x1a   : > { %s777_s16 = sshll.u32 %s285_s13, 3  ;;  %s854_s13 = sshll.u32 %s965_s27, 4  ;;  %s855_s13 = int_to_ptr.vmem [resolvable:$false] %s854_s13 }
  0x1b   : > { %s291_s19 = scalar_lea.vmem %s1173_s0, %s777_s16  ;;  %s856_s14 = scalar_lea.vmem %s855_s13, 256 }
  0x1c   : > { %v303_v4 = vld [vmem:[%s291_s19] sm:$0xff]  ;;  %s759_s19 = sshll.u32 %s1087_s18, 3 }
  0x1d   : > { %v310_v5 = vcombine.high %v303_v4, %v303_v4  ;;  %s282_s28 = scalar_lea.vmem [#allocation4], %s759_s19  ;;  %s610_s19 = scalar_lea.sflag [#allocation5], %s1087_s18 }
  0x1e   : > { %s642_s30 = sshll.u32 %s282_s28, 4  ;;  %s1098_s30 = int_to_ptr.vmem [resolvable:$true] %s642_s30 }
  0x1f   : > { %762 = vmatprep.subr.msk.mxu0 %vm315_vm0, %v310_v5  ;;  %s850_s20 = scalar_lea.vmem %s1098_s30, 128  ;;  %p857_p1 = scmp.lt.s32.totalorder %s1098_s30, %s855_s13 }
  0x20   : > { %763 = vmatpush1.msk.msra.mxu0 %vm315_vm0, %v303_v4  ;;  %p851_p12 = scmp.ne.s32.totalorder %s1098_s30, %s850_s20  ;;  %p858_p2 = scmp.lt.s32.totalorder %s856_s14, %s850_s20 }
  0x21   : > { %764 = vmatmul.mubr.msk.f32.vlgmr.msra.gmra.mrb[0].mxu0 %vm311_vm1, %v295_v6 }
  0x22   : > { %564 = vmatprep.mubr.f32.mxu0 %v962_v0  ;;  %p852_p13 = pnand %p851_p12, %p1042_p4  ;;  %p859_p3 = por %p858_p2, %p857_p1 }
  0x24   : > { %p853_p0 = pneg %p852_p13 }
  0x26   : > { %p860_p5 = pnand %p859_p3, %p853_p0 }
  0x91   : > { %v307_v9 = vpop.permute.xlu0 %306 }
  0x93   : > { %v401_v22 = vpop.permute.xlu1 %400 }
  0x95   : > { %v396_v20 = vpop.permute.xlu0 %395 }
  0x97   : > { %v494_v40 = vpop.permute.xlu1 %493 }
  0xf4   : > { %v386_v10 = vpop.f32.mrb[0].mxu0 }
  0xf5   : > { %v387_v11 = vadd.f32 %v386_v10, %v307_v9  ;;  %v388_v12 = vpop.f32.mrb[1].mxu0 }
  0xf6   : > { %v389_v13 = vadd.f32 %v388_v12, %v307_v9 }
  0xf7   : > { %v391_v15 = vmax.f32 %v387_v11, 0.0 }
  0xf8   : > { %v392_v14 = vmax.f32 %v389_v13, 0.0 }
  0xfa   : > { %410 = vmatprep.subr.mxu1 %v392_v14 }
  0xfb   : > { %411 = vmatpush1.msra.mxu1 %v391_v15 }
  0xfc   : > { %765 = vmatmul.mubr.msk.f32.vlgmr.msra.gmra.mrb[0].mxu1 %vm403_vm2, %v296_v16 }
  0xfd   : > { %480 = vmatprep.mubr.f32.mxu1 %v962_v0 }
 0x100   : > { %766 = vmatmul.mubr.msk.f32.gmra.mrb[2].mxu1 %vm403_vm2, %v297_v17 }
 0x1cf   : > { %v476_v18 = vpop.f32.mrb[0].mxu1 }
 0x1d0   : > { %v478_v19 = vpop.f32.mrb[1].mxu1  ;;  %v477_v21 = vadd.f32 %v476_v18, %v396_v20 }
 0x1d1   : > { %v479_v23 = vadd.f32 %v478_v19, %v396_v20 }
 0x1d2   : > { %v487_v28 = vmax.f32 %v477_v21, 0.0 }
 0x1d3   : > { %v482_v24 = vpop.f32.mrb[2].mxu1  ;;  %v488_v30 = vmax.f32 %v479_v23, 0.0 }
 0x1d4   : > { %v483_v25 = vadd.f32 %v482_v24, %v401_v22  ;;  %v484_v26 = vpop.f32.mrb[3].mxu1 }
 0x1d5   : > { %v485_v27 = vadd.f32 %v484_v26, %v401_v22 }
 0x1d6   : > { %v489_v29 = vmax.f32 %v483_v25, 0.0 }
 0x1d7   : > { %v490_v31 = vmax.f32 %v485_v27, 0.0 }
 0x1d8   : > { %v782_v32 = vpack.c.bf16 %v489_v29, %v487_v28 }
 0x1d9   : > { %v780_v33 = vpack.c.bf16 %v490_v31, %v488_v30 }
 0x1db   : > { %781 = vmatprep.subr.bf16.mxu0 %v780_v33 }
 0x1dc   : > { %783 = vmatpush1.bf16.msra.mxu0 %v782_v32 }
 0x1df   : > { %767 = vmatmul.mubr.msk.f32.vlgmr.msra.gmra.mrb[2].mxu0 %vm496_vm3, %v298_v34 }
 0x2b2   : > { %v566_v41 = vpop.f32.mrb[2].mxu0 }
 0x2b3   : > { %v567_v42 = vadd.f32 %v566_v41, %v494_v40  ;;  %v568_v43 = vpop.f32.mrb[3].mxu0 }
 0x2b4   : > { %v569_v44 = vadd.f32 %v568_v43, %v494_v40 }
 0x2b6   : > { %v573_v46 = vcombine.low %v567_v42, %v569_v44  ;;  %v594_v47 = vcombine.high %v567_v42, %v569_v44 }
 0x2b8   : > { %v580_v48 = vrot.slane %v573_v46, %v579_v45  ;;  %v768_v49 = vrot.slane %v573_v46, 9  ;;  %v600_v50 = vrot.slane %v594_v47, 5 }
 0x2ba   : > { %v587_v51 = vrot.slane %v580_v48, %v579_v45  ;;  %v601_v52 = vsel %vm597_vm6, %v768_v49, %v600_v50 }
 0x2bb   : > { %603 = vst [vmem:[%s282_s28] sm:$0xff] %v601_v52 }
 0x2bc   : > { %593 = vst.msk [vmem:[%s275_s11] sm:$0x3] %vm591_vm7, %v587_v51 }
 0x2bd   : > { %863 = shalt.err (!%p860_p5)
}
 0x2be   : > { %s864_s28 = scalar_lea.hbm %s1096_s15, 128  ;;  %s868_s24 = scalar_lea.hbm %s1179_s6, 256 }
 0x2bf   : > { %p865_p6 = scmp.ne.s32.totalorder %s1096_s15, %s864_s28  ;;  %p869_p10 = scmp.lt.u32.totalorder %s1096_s15, %s1179_s6 }
 0x2c0   : > { %p870_p11 = scmp.lt.u32.totalorder %s868_s24, %s864_s28  ;;  %p872_p13 = scmp.lt.u32.totalorder %s864_s28, %s1096_s15 }
 0x2c1   : > { %p866_p7 = pnand %p865_p6, %p1042_p4 }
 0x2c2   : > { %p871_p12 = por %p870_p11, %p869_p10 }
 0x2c3   : > { %p867_p9 = pneg %p866_p7 }
 0x2c4   : > { %p873_p0 = por %p872_p13, %p871_p12 }
 0x2c6   : > { %p874_p1 = pnand %p873_p0, %p867_p9 }
 0x2c8   : > { %877 = shalt.err (!%p874_p1)
}
 0x2c9   : > { %785 = dma.vmem_to_hbm [thread:$0]  (%p1042_p4), %s1098_s30, 128, %s1096_s15, %s610_s19  }
 0x2ca   : > { %s605_s20 = scalar_lea.sflag [#allocation3], %s1087_s18  ;;  %s878_s13 = scalar_lea.vmem %s1105_s12, 32 }
 0x2cb   : > { %p879_p2 = scmp.ne.s32.totalorder %s1105_s12, %s878_s13  ;;  %s966_s14 = smov [#allocation2]  }
 0x2cc   : > { %s882_s28 = sshll.u32 %s966_s14, 4  ;;  %s883_s28 = int_to_ptr.vmem [resolvable:$false] %s882_s28 }
 0x2cd   : > { %p880_p3 = pnand %p879_p2, %p1042_p4  ;;  %s884_s8 = scalar_lea.vmem %s883_s28, 64 }
 0x2ce   : > { %p885_p6 = scmp.lt.s32.totalorder %s1105_s12, %s883_s28  ;;  %p886_p7 = scmp.lt.s32.totalorder %s884_s8, %s878_s13 }
 0x2cf   : > { %p881_p5 = pneg %p880_p3 }
 0x2d0   : > { %p887_p9 = por %p886_p7, %p885_p6 }
 0x2d2   : > { %p888_p10 = pnand %p887_p9, %p881_p5 }
 0x2d4   : > { %891 = shalt.err (!%p888_p10)
}
 0x2d5   : > { %s892_s18 = scalar_lea.hbm %s1103_s17, 32  ;;  %s896_s19 = scalar_lea.hbm %s1178_s5, 64 }
 0x2d6   : > { %p893_p11 = scmp.ne.s32.totalorder %s1103_s17, %s892_s18  ;;  %p897_p0 = scmp.lt.u32.totalorder %s1103_s17, %s1178_s5 }
 0x2d7   : > { %p898_p1 = scmp.lt.u32.totalorder %s896_s19, %s892_s18  ;;  %p900_p3 = scmp.lt.u32.totalorder %s892_s18, %s1103_s17 }
 0x2d8   : > { %p894_p12 = pnand %p893_p11, %p1042_p4 }
 0x2d9   : > { %p899_p2 = por %p898_p1, %p897_p0 }
 0x2da   : > { %p895_p13 = pneg %p894_p12 }
 0x2db   : > { %p901_p5 = por %p900_p3, %p899_p2 }
 0x2dd   : > { %p902_p6 = pnand %p901_p5, %p895_p13 }
 0x2df   : > { %905 = shalt.err (!%p902_p6)
}
 0x2e0   : > { %784 = dma.vmem_to_hbm [thread:$0]  (%p1042_p4), %s1105_s12, 32, %s1103_s17, %s605_s20  }
 0x2e1 PF: > { %p795_p7 = scmp.ge.s32.totalorder %s960_s26, 2  ;;  %s654_s16 = sand.u32 1, %s940_s21  }
 0x2e2   : > { %s655_s27 = scalar_lea.sflag [#allocation3], %s654_s16 }
 0x2e3   : > { %p789_p9 = pnand %p795_p7, %p1049_p8 }
 0x2e5   : > { %931 = dma.done.wait (!%p789_p9), %s655_s27, 32  }
 0x2e6   : > { %933 = vsyncadd (!%p789_p9), %s655_s27, 4294967264  ;;  %s664_s13 = scalar_lea.sflag [#allocation5], %s654_s16 }
 0x2e7   : > { %935 = dma.done.wait (!%p789_p9), %s664_s13, 128  }
 0x2e8   : > { %937 = vsyncadd (!%p789_p9), %s664_s13, 4294967168  ;;  %s23_s26 = sadd.s32 1, %s960_s26   ;;  %s1182_s21 = smov %s944_s22 }
 0x2e9   : > { %p20_p10 = scmp.ge.s32.totalorder %s23_s26, 4   ;;  %s1183_s22 = smov %s948_s23 }
 0x2ea   : > { %s1184_s23 = smov %s1055_s10  ;;  %s1185_s24 = smov %s956_s25 }
 0x2eb   : > { %s1186_s25 = smov %s1188_s29  ;;  %22 = sbr.rel (!%p20_p10) target bundleno = 6 (0x6), region = 92 }
 0x2f2   :  { %669 = vsyncpa [#allocation3], 1 }
 0x2f3   :  { %671 = vsyncpa [#allocation3 + $0x1], 1 }
 0x2f4   :  { %672 = vsyncpa [#allocation5], 1 }
 0x2f5   :  { %674 = vsyncpa [#allocation5 + $0x1], 1 }

</bundles_post_ra>
